<compile_context>
chip_gen: v7x
topology: tpu7x:2x2x1
jax: 0.10.0
libtpu: 0.0.40
codegen_flags: <defaults>
</compile_context>

<pallas_src>
import numpy as np

import jax
import jax.numpy as jnp
from jax.experimental import pallas as pl
from jax.experimental.pallas import tpu as pltpu


KERNEL_SIZE = 3


# ---------------------------------------------------------------------------
# Host-side helpers: layer geometry and tiny constant matrices
# ---------------------------------------------------------------------------

def same_padding(kernel_size, stride):
    total = kernel_size - stride
    assert total >= 0, "stride > kernel_size (cropping) not implemented"
    return total // 2, total - total // 2


def layer_geometry(T, in_size, data_size, noise_bands, ratios):
    channels = [in_size] * len(ratios) + [data_size * noise_bands]
    layers = []
    t = T
    for i, r in enumerate(ratios):
        left, right = same_padding(KERNEL_SIZE, r)
        t_pad = t + left + right
        t_out = (t_pad - KERNEL_SIZE) // r + 1
        layers.append(dict(c_in=channels[i], c_out=channels[i + 1], stride=r,
                           t_in=t, t_out=t_out, t_pad=t_pad,
                           pad_left=left, pad_right=right))
        t = t_out
    return layers, t


def build_ir_matrix(noise_bands, target_size):
    """(noise_bands, target_size) matrix == amp_to_impulse_response():
    irfft(real spectrum) -> roll(F//2) -> periodic Hann -> pad -> roll(-F//2)."""
    F = 2 * (noise_bands - 1)
    assert noise_bands >= 2 and target_size >= F
    n = np.arange(F)
    M = np.cos(2.0 * np.pi * np.outer(np.arange(noise_bands), n) / F) / F
    M[1:noise_bands - 1] *= 2.0          # hermitian-double the interior bins
    M = np.roll(M, F // 2, axis=1)
    M = M * (0.5 * (1.0 - np.cos(2.0 * np.pi * n / F)))[None, :]
    out = np.zeros((noise_bands, target_size), np.float32)
    out[:, :F] = M
    return np.roll(out, -(F // 2), axis=1).astype(np.float32)


def build_conv_matrices(S):
    """0/1 matrices turning the truncated causal convolution
       out[t, i] = sum_{j<=i} ir[t, j] * noise[t, i-j]
    (== fft_convolve(noise, ir) after its padding/crop) into three matmuls:
       out = ((ir @ rep) * (noise @ shf)) @ seg."""
    rep = np.zeros((S, S * S), np.float32)   # replicate ir[j] across segment j
    shf = np.zeros((S, S * S), np.float32)   # shift noise by j within segment j
    seg = np.zeros((S * S, S), np.float32)   # sum the S segments
    for j in range(S):
        for i in range(S):
            rep[j, j * S + i] = 1.0
            seg[j * S + i, i] = 1.0
            if i - j >= 0:
                shf[i - j, j * S + i] = 1.0
    return rep, shf, seg


def block_diag(mat, D):
    r, c = mat.shape
    out = np.zeros((D * r, D * c), np.float32)
    for d in range(D):
        out[d * r:(d + 1) * r, d * c:(d + 1) * c] = mat
    return out


# ---------------------------------------------------------------------------
# Pallas kernel
# ---------------------------------------------------------------------------

def make_noise_generator_kernel(layers, data_size, noise_bands, target_size,
                                t_frames):
    n_layers = len(layers)

    def kernel(*refs):
        idx = 0
        x_ref = refs[idx]; idx += 1                                   # (T, C_in)
        noise_ref = refs[idx]; idx += 1                               # (TF, D*S)
        w_refs, b_refs = [], []
        for _ in range(n_layers):
            w_refs.append(refs[idx]); b_refs.append(refs[idx + 1]); idx += 2
        irm_ref, rep_ref, shf_ref, seg_ref = refs[idx:idx + 4]; idx += 4
        o_ref = refs[idx]; idx += 1                                   # (TF, D*S)
        scr_refs = refs[idx:idx + n_layers]                           # padded acts

        # ---- conv stack, time-major (T, C); taps via static strided loads ----
        h = x_ref[...]
        for l, geo in enumerate(layers):
            c_in, c_out = geo["c_in"], geo["c_out"]
            t_in, t_out, r = geo["t_in"], geo["t_out"], geo["stride"]
            lpad, rpad = geo["pad_left"], geo["pad_right"]
            scr = scr_refs[l]                                          # (t_pad, c_in)
            if lpad > 0:
                scr[pl.ds(0, lpad), :] = jnp.zeros((lpad, c_in), jnp.float32)
            if rpad > 0:
                scr[pl.ds(lpad + t_in, rpad), :] = jnp.zeros((rpad, c_in),
                                                             jnp.float32)
            scr[pl.ds(lpad, t_in), :] = h
            # gather the 3 taps (stride r) and fuse into one MXU matmul
            taps = jnp.concatenate(
                [scr[pl.ds(k, t_out, stride=r), :] for k in range(KERNEL_SIZE)],
                axis=1)                                                # (t_out, 3*c_in)
            acc = jnp.dot(taps, w_refs[l][...],
                          preferred_element_type=jnp.float32) + b_refs[l][...]
            if l < n_layers - 1:
                h = jnp.where(acc > 0, acc, 0.2 * acc)                 # LeakyReLU(0.2)
            else:
                h = acc                                                # (TF, D*NB)

        # ---- amp = mod_sigmoid(net(x) - 5) = 2*sigmoid(.)**2.3 + 1e-7 ----
        sig = 1.0 / (1.0 + jnp.exp(-(h - 5.0)))
        amp = 2.0 * jnp.exp(2.3 * jnp.log(sig)) + 1e-7                 # (TF, D*NB)

        # ---- ir synthesis + noise colouring, block-diagonal across D ----
        noise_all = noise_ref[...]                                     # (TF, D*S)
        ir_all = jnp.dot(amp, irm_ref[...],
                         preferred_element_type=jnp.float32)           # (TF, D*S)
        ir_rep = jnp.dot(ir_all, rep_ref[...],
                         preferred_element_type=jnp.float32)           # (TF, D*S*S)
        nz_shift = jnp.dot(noise_all, shf_ref[...],
                           preferred_element_type=jnp.float32)         # (TF, D*S*S)
        o_ref[...] = jnp.dot(ir_rep * nz_shift, seg_ref[...],
                             preferred_element_type=jnp.float32)       # (TF, D*S)

    return kernel


# ---------------------------------------------------------------------------
# Wrapper
# ---------------------------------------------------------------------------

def build_noise_generator(T, in_size, data_size, ratios, noise_bands):
    layers, t_frames = layer_geometry(T, in_size, data_size, noise_bands, ratios)
    S = int(np.prod(ratios))
    D, NB = data_size, noise_bands

    kernel = make_noise_generator_kernel(layers, D, NB, S, t_frames)

    irm_bd = jnp.asarray(block_diag(build_ir_matrix(NB, S), D))
    rep, shf, seg = build_conv_matrices(S)
    rep_bd = jnp.asarray(block_diag(rep, D))
    shf_bd = jnp.asarray(block_diag(shf, D))
    seg_bd = jnp.asarray(block_diag(seg, D))

    scratch_shapes = [pltpu.VMEM((g["t_pad"], g["c_in"]), jnp.float32)
                      for g in layers]

    def forward(x, weights, biases, *, noise=None, key=None):
        """x: (B, in_size, T). noise: (B, t_frames, D*S) in [-1,1) or None."""
        B = x.shape[0]
        x_tc = jnp.transpose(x, (0, 2, 1)).astype(jnp.float32)        # (B, T, C_in)
        if noise is None:
            noise = jax.random.uniform(key, (B, t_frames, D * S), jnp.float32,
                                       -1.0, 1.0)
        noise = jnp.asarray(noise, jnp.float32).reshape(B, t_frames, D * S)

        call_inputs = [x_tc, noise]
        in_specs = [pl.BlockSpec((None, T, in_size), lambda b: (b, 0, 0)),
                    pl.BlockSpec((None, t_frames, D * S), lambda b: (b, 0, 0))]

        def const_spec(arr):
            return pl.BlockSpec(tuple(arr.shape), lambda b: (0, 0))

        for g, W, bias in zip(layers, weights, biases):
            c_in, c_out = g["c_in"], g["c_out"]
            w_stacked = jnp.transpose(W, (2, 1, 0)).reshape(
                KERNEL_SIZE * c_in, c_out).astype(jnp.float32)
            b_row = jnp.reshape(bias, (1, c_out)).astype(jnp.float32)
            for arr in (w_stacked, b_row):
                call_inputs.append(arr)
                in_specs.append(const_spec(arr))
        for arr in (irm_bd, rep_bd, shf_bd, seg_bd):
            call_inputs.append(arr)
            in_specs.append(const_spec(arr))

        out_spec = pl.BlockSpec((None, t_frames, D * S), lambda b: (b, 0, 0))

        flops = 0
        for g in layers:
            flops += 2 * g["t_out"] * (KERNEL_SIZE * g["c_in"]) * g["c_out"]
        flops += 2 * t_frames * (D * NB * D * S + 2 * D * S * D * S * S
                                 + D * S * S * D * S)
        flops *= B
        bytes_accessed = 4 * (int(x_tc.size) + int(noise.size)
                              + B * t_frames * D * S
                              + sum(int(a.size) for a in call_inputs[2:]))
        cost = pl.CostEstimate(flops=int(flops),
                               transcendentals=int(3 * B * t_frames * D * NB),
                               bytes_accessed=int(bytes_accessed))

        out = pl.pallas_call(
            kernel,
            out_shape=jax.ShapeDtypeStruct((B, t_frames, D * S), jnp.float32),
            grid=(B,),
            in_specs=in_specs,
            out_specs=out_spec,
            scratch_shapes=scratch_shapes,
            compiler_params=pltpu.CompilerParams(
                dimension_semantics=("parallel",)),
            cost_estimate=cost,
        )(*call_inputs)

        # (B, T_frames, D, S) -> (B, D, T_frames*S)  (== permute + reshape)
        out = out.reshape(B, t_frames, D, S).transpose(0, 2, 1, 3)
        return out.reshape(B, D, t_frames * S)

    return forward, layers, t_frames


# ---------------------------------------------------------------------------
# Pure-JAX reference (uses the real FFT path, like the PyTorch code)
# ---------------------------------------------------------------------------

def noise_generator_reference(x, weights, biases, noise, data_size, ratios,
                              noise_bands):
    B = x.shape[0]
    D, NB = data_size, noise_bands
    S = int(np.prod(ratios))
    n_layers = len(ratios)

    h = jnp.transpose(x, (0, 2, 1)).astype(jnp.float32)               # (B, T, C)
    for l, (W, bias) in enumerate(zip(weights, biases)):
        r = ratios[l]
        left, right = same_padding(KERNEL_SIZE, r)
        hp = jnp.pad(h, ((0, 0), (left, right), (0, 0)))
        t_out = (hp.shape[1] - KERNEL_SIZE) // r + 1
        acc = jnp.zeros((B, t_out, W.shape[0]), jnp.float32) + bias[None, None, :]
        for k in range(KERNEL_SIZE):
            xk = hp[:, k:k + r * (t_out - 1) + 1:r, :]
            acc = acc + jnp.einsum("btc,oc->bto", xk, W[:, :, k],
                                   precision=jax.lax.Precision.HIGHEST)
        h = acc if l == n_layers - 1 else jnp.where(acc > 0, acc, 0.2 * acc)

    amp = 2.0 * jax.nn.sigmoid(h - 5.0) ** 2.3 + 1e-7                 # (B, TF, D*NB)
    t_frames = amp.shape[1]
    amp = amp.reshape(B, t_frames, D, NB)

    # amp_to_impulse_response
    F = 2 * (NB - 1)
    ir = jnp.fft.irfft(amp.astype(jnp.complex64), axis=-1)            # (B, TF, D, F)
    ir = jnp.roll(ir, F // 2, axis=-1)
    win = 0.5 * (1.0 - jnp.cos(2.0 * jnp.pi * jnp.arange(F) / F))
    ir = ir * win
    ir = jnp.pad(ir, ((0, 0), (0, 0), (0, 0), (0, S - F)))
    ir = jnp.roll(ir, -(F // 2), axis=-1)

    # fft_convolve(noise, ir)
    sig = jnp.pad(noise, ((0, 0), (0, 0), (0, 0), (0, S)))
    ker = jnp.pad(ir, ((0, 0), (0, 0), (0, 0), (S, 0)))
    out = jnp.fft.irfft(jnp.fft.rfft(sig, axis=-1) * jnp.fft.rfft(ker, axis=-1),
                        axis=-1)
    out = out[..., out.shape[-1] // 2:]                               # (B, TF, D, S)
    return jnp.transpose(out, (0, 2, 1, 3)).reshape(B, D, -1)


# ---------------------------------------------------------------------------
# Demo / self-check
# ---------------------------------------------------------------------------

if __name__ == "__main__":
    B = 2
    IN_SIZE = 16
    DATA_SIZE = 2
    RATIOS = [2, 2, 2]          # target_size = prod(ratios) = 8
    NOISE_BANDS = 4             # impulse-response length = 2*(NB-1) = 6
    T = 64

    key = jax.random.PRNGKey(0)
    k_x, k_w, k_n = jax.random.split(key, 3)
    x = jax.random.normal(k_x, (B, IN_SIZE, T), jnp.float32)

    # Conv parameters (same shapes / init range as the nn.Conv1d layers).
    channels = [IN_SIZE] * len(RATIOS) + [DATA_SIZE * NOISE_BANDS]
    weights, biases = [], []
    for i in range(len(RATIOS)):
        k_w, k1, k2 = jax.random.split(k_w, 3)
        c_in, c_out = channels[i], channels[i + 1]
        bound = 1.0 / np.sqrt(c_in * KERNEL_SIZE)
        weights.append(jax.random.uniform(k1, (c_out, c_in, KERNEL_SIZE),
                                          jnp.float32, -bound, bound))
        biases.append(jax.random.uniform(k2, (c_out,), jnp.float32,
                                         -bound, bound))

    S = int(np.prod(RATIOS))

    fwd, _, t_frames = build_noise_generator(T, IN_SIZE, DATA_SIZE, RATIOS,
                                             NOISE_BANDS)

    # Path 1: externally supplied noise -> verified against the jnp.fft reference.
    noise4 = jax.random.uniform(k_n, (B, t_frames, DATA_SIZE, S), jnp.float32,
                                -1.0, 1.0)
    out = fwd(x, weights, biases,
              noise=noise4.reshape(B, t_frames, DATA_SIZE * S))
    out = jax.block_until_ready(out)

    ref = jax.block_until_ready(
        noise_generator_reference(x, weights, biases, noise4,
                                  DATA_SIZE, RATIOS, NOISE_BANDS))
    assert out.shape == (B, DATA_SIZE, T), out.shape
    np.testing.assert_allclose(np.asarray(out), np.asarray(ref),
                               rtol=2e-2, atol=1e-6)

    # Path 2: noise drawn in the wrapper (same kernel, fresh randomness).
    out_rng = jax.block_until_ready(
        fwd(x, weights, biases, key=jax.random.PRNGKey(1234)))
    assert out_rng.shape == (B, DATA_SIZE, T), out_rng.shape
    assert bool(jnp.all(jnp.isfinite(out_rng)))

    print("KERNEL_OK")
</pallas_src>

<mosaic_0001>
module attributes {stable_mosaic.version = 11 : i64} {
  func.func @kernel(%arg0: i32, %arg1: memref<1x64x16xf32, #tpu.memory_space<vmem>>, %arg2: memref<1x8x16xf32, #tpu.memory_space<vmem>>, %arg3: memref<48x16xf32, #tpu.memory_space<vmem>>, %arg4: memref<1x16xf32, #tpu.memory_space<vmem>>, %arg5: memref<48x16xf32, #tpu.memory_space<vmem>>, %arg6: memref<1x16xf32, #tpu.memory_space<vmem>>, %arg7: memref<48x8xf32, #tpu.memory_space<vmem>>, %arg8: memref<1x8xf32, #tpu.memory_space<vmem>>, %arg9: memref<8x16xf32, #tpu.memory_space<vmem>>, %arg10: memref<16x128xf32, #tpu.memory_space<vmem>>, %arg11: memref<16x128xf32, #tpu.memory_space<vmem>>, %arg12: memref<128x16xf32, #tpu.memory_space<vmem>>, %arg13: memref<1x8x16xf32, #tpu.memory_space<vmem>>, %arg14: memref<65x16xf32, #tpu.memory_space<vmem>>, %arg15: memref<33x16xf32, #tpu.memory_space<vmem>>, %arg16: memref<17x16xf32, #tpu.memory_space<vmem>>) attributes {dimension_semantics = [#tpu.dimension_semantics<parallel>], iteration_bounds = array<i64: 2>, scalar_prefetch = 0 : i64, scratch_operands = 3 : i64, tpu.core_type = #tpu.core_type<tc>, window_params = [{transform_indices = @transform_0, window_bounds = array<i64: 1, 64, 16>}, {transform_indices = @transform_1, window_bounds = array<i64: 1, 8, 16>}, {pipeline_mode = #tpu.pipeline_mode<synchronous>, transform_indices = @transform_2, window_bounds = array<i64: 48, 16>}, {pipeline_mode = #tpu.pipeline_mode<synchronous>, transform_indices = @transform_3, window_bounds = array<i64: 1, 16>}, {pipeline_mode = #tpu.pipeline_mode<synchronous>, transform_indices = @transform_4, window_bounds = array<i64: 48, 16>}, {pipeline_mode = #tpu.pipeline_mode<synchronous>, transform_indices = @transform_5, window_bounds = array<i64: 1, 16>}, {pipeline_mode = #tpu.pipeline_mode<synchronous>, transform_indices = @transform_6, window_bounds = array<i64: 48, 8>}, {pipeline_mode = #tpu.pipeline_mode<synchronous>, transform_indices = @transform_7, window_bounds = array<i64: 1, 8>}, {pipeline_mode = #tpu.pipeline_mode<synchronous>, transform_indices = @transform_8, window_bounds = array<i64: 8, 16>}, {pipeline_mode = #tpu.pipeline_mode<synchronous>, transform_indices = @transform_9, window_bounds = array<i64: 16, 128>}, {pipeline_mode = #tpu.pipeline_mode<synchronous>, transform_indices = @transform_10, window_bounds = array<i64: 16, 128>}, {pipeline_mode = #tpu.pipeline_mode<synchronous>, transform_indices = @transform_11, window_bounds = array<i64: 128, 16>}, {transform_indices = @transform_12, window_bounds = array<i64: 1, 8, 16>}]} {
    %c0 = arith.constant 0 : index
    %c0_0 = arith.constant 0 : index
    %c0_1 = arith.constant 0 : index
    %0 = vector.load %arg1[%c0, %c0_0, %c0_1] : memref<1x64x16xf32, #tpu.memory_space<vmem>>, vector<1x64x16xf32>
    %1 = vector.shape_cast %0 : vector<1x64x16xf32> to vector<64x16xf32>
    %cst = arith.constant 0.000000e+00 : f32
    %2 = vector.broadcast %cst : f32 to vector<1x16xf32>
    %c64 = arith.constant 64 : index
    %c0_2 = arith.constant 0 : index
    %3 = vector.load %arg14[%c64, %c0_2] : memref<65x16xf32, #tpu.memory_space<vmem>>, vector<1x16xf32>
    tpu.vector_store %arg14[%c64, %c0_2], %2 {strides = array<i32>} : memref<65x16xf32, #tpu.memory_space<vmem>>, vector<1x16xf32>,
    %c0_3 = arith.constant 0 : index
    %c0_4 = arith.constant 0 : index
    %4 = vector.load %arg14[%c0_3, %c0_4] : memref<65x16xf32, #tpu.memory_space<vmem>>, vector<64x16xf32>
    tpu.vector_store %arg14[%c0_3, %c0_4], %1 {strides = array<i32>} : memref<65x16xf32, #tpu.memory_space<vmem>>, vector<64x16xf32>,
    %c0_5 = arith.constant 0 : index
    %c0_6 = arith.constant 0 : index
    %5 = tpu.strided_load %arg14[%c0_5, %c0_6] {strides = array<i32: 2, 1>} : memref<65x16xf32, #tpu.memory_space<vmem>>, vector<32x16xf32>
    %c1 = arith.constant 1 : index
    %c0_7 = arith.constant 0 : index
    %6 = tpu.strided_load %arg14[%c1, %c0_7] {strides = array<i32: 2, 1>} : memref<65x16xf32, #tpu.memory_space<vmem>>, vector<32x16xf32>
    %c2 = arith.constant 2 : index
    %c0_8 = arith.constant 0 : index
    %7 = tpu.strided_load %arg14[%c2, %c0_8] {strides = array<i32: 2, 1>} : memref<65x16xf32, #tpu.memory_space<vmem>>, vector<32x16xf32>
    %8 = tpu.concatenate %5, %6, %7 in 1 : vector<32x16xf32>, vector<32x16xf32>, vector<32x16xf32> -> vector<32x48xf32>
    %c0_9 = arith.constant 0 : index
    %c0_10 = arith.constant 0 : index
    %9 = vector.load %arg3[%c0_9, %c0_10] : memref<48x16xf32, #tpu.memory_space<vmem>>, vector<48x16xf32>
    %cst_11 = arith.constant dense<0.000000e+00> : vector<32x16xf32>
    %10 = tpu.matmul %8, %9, %cst_11 {dimension_numbers = #tpu.dot_dimension_numbers<[1], [0], [0], [1], [0, 0, 1, 1], [], []>} : vector<32x48xf32>, vector<48x16xf32>, vector<32x16xf32> -> vector<32x16xf32>
    %c0_12 = arith.constant 0 : index
    %c0_13 = arith.constant 0 : index
    %11 = vector.load %arg4[%c0_12, %c0_13] : memref<1x16xf32, #tpu.memory_space<vmem>>, vector<1x16xf32>
    %12 = vector.broadcast %11 : vector<1x16xf32> to vector<32x16xf32>
    %13 = arith.addf %10, %12 : vector<32x16xf32>
    %cst_14 = arith.constant 0.000000e+00 : f32
    %14 = vector.broadcast %cst_14 : f32 to vector<32x16xf32>
    %15 = arith.cmpf ogt, %13, %14 : vector<32x16xf32>
    %cst_15 = arith.constant 2.000000e-01 : f32
    %16 = vector.broadcast %cst_15 : f32 to vector<32x16xf32>
    %17 = arith.mulf %16, %13 : vector<32x16xf32>
    %18 = arith.select %15, %13, %17 : vector<32x16xi1>, vector<32x16xf32>
    %cst_16 = arith.constant 0.000000e+00 : f32
    %19 = vector.broadcast %cst_16 : f32 to vector<1x16xf32>
    %c32 = arith.constant 32 : index
    %c0_17 = arith.constant 0 : index
    %20 = vector.load %arg15[%c32, %c0_17] : memref<33x16xf32, #tpu.memory_space<vmem>>, vector<1x16xf32>
    tpu.vector_store %arg15[%c32, %c0_17], %19 {strides = array<i32>} : memref<33x16xf32, #tpu.memory_space<vmem>>, vector<1x16xf32>,
    %c0_18 = arith.constant 0 : index
    %c0_19 = arith.constant 0 : index
    %21 = vector.load %arg15[%c0_18, %c0_19] : memref<33x16xf32, #tpu.memory_space<vmem>>, vector<32x16xf32>
    tpu.vector_store %arg15[%c0_18, %c0_19], %18 {strides = array<i32>} : memref<33x16xf32, #tpu.memory_space<vmem>>, vector<32x16xf32>,
    %c0_20 = arith.constant 0 : index
    %c0_21 = arith.constant 0 : index
    %22 = tpu.strided_load %arg15[%c0_20, %c0_21] {strides = array<i32: 2, 1>} : memref<33x16xf32, #tpu.memory_space<vmem>>, vector<16x16xf32>
    %c1_22 = arith.constant 1 : index
    %c0_23 = arith.constant 0 : index
    %23 = tpu.strided_load %arg15[%c1_22, %c0_23] {strides = array<i32: 2, 1>} : memref<33x16xf32, #tpu.memory_space<vmem>>, vector<16x16xf32>
    %c2_24 = arith.constant 2 : index
    %c0_25 = arith.constant 0 : index
    %24 = tpu.strided_load %arg15[%c2_24, %c0_25] {strides = array<i32: 2, 1>} : memref<33x16xf32, #tpu.memory_space<vmem>>, vector<16x16xf32>
    %25 = tpu.concatenate %22, %23, %24 in 1 : vector<16x16xf32>, vector<16x16xf32>, vector<16x16xf32> -> vector<16x48xf32>
    %c0_26 = arith.constant 0 : index
    %c0_27 = arith.constant 0 : index
    %26 = vector.load %arg5[%c0_26, %c0_27] : memref<48x16xf32, #tpu.memory_space<vmem>>, vector<48x16xf32>
    %cst_28 = arith.constant dense<0.000000e+00> : vector<16x16xf32>
    %27 = tpu.matmul %25, %26, %cst_28 {dimension_numbers = #tpu.dot_dimension_numbers<[1], [0], [0], [1], [0, 0, 1, 1], [], []>} : vector<16x48xf32>, vector<48x16xf32>, vector<16x16xf32> -> vector<16x16xf32>
    %c0_29 = arith.constant 0 : index
    %c0_30 = arith.constant 0 : index
    %28 = vector.load %arg6[%c0_29, %c0_30] : memref<1x16xf32, #tpu.memory_space<vmem>>, vector<1x16xf32>
    %29 = vector.broadcast %28 : vector<1x16xf32> to vector<16x16xf32>
    %30 = arith.addf %27, %29 : vector<16x16xf32>
    %cst_31 = arith.constant 0.000000e+00 : f32
    %31 = vector.broadcast %cst_31 : f32 to vector<16x16xf32>
    %32 = arith.cmpf ogt, %30, %31 : vector<16x16xf32>
    %cst_32 = arith.constant 2.000000e-01 : f32
    %33 = vector.broadcast %cst_32 : f32 to vector<16x16xf32>
    %34 = arith.mulf %33, %30 : vector<16x16xf32>
    %35 = arith.select %32, %30, %34 : vector<16x16xi1>, vector<16x16xf32>
    %cst_33 = arith.constant 0.000000e+00 : f32
    %36 = vector.broadcast %cst_33 : f32 to vector<1x16xf32>
    %c16 = arith.constant 16 : index
    %c0_34 = arith.constant 0 : index
    %37 = vector.load %arg16[%c16, %c0_34] : memref<17x16xf32, #tpu.memory_space<vmem>>, vector<1x16xf32>
    tpu.vector_store %arg16[%c16, %c0_34], %36 {strides = array<i32>} : memref<17x16xf32, #tpu.memory_space<vmem>>, vector<1x16xf32>,
    %c0_35 = arith.constant 0 : index
    %c0_36 = arith.constant 0 : index
    %38 = vector.load %arg16[%c0_35, %c0_36] : memref<17x16xf32, #tpu.memory_space<vmem>>, vector<16x16xf32>
    tpu.vector_store %arg16[%c0_35, %c0_36], %35 {strides = array<i32>} : memref<17x16xf32, #tpu.memory_space<vmem>>, vector<16x16xf32>,
    %c0_37 = arith.constant 0 : index
    %c0_38 = arith.constant 0 : index
    %39 = tpu.strided_load %arg16[%c0_37, %c0_38] {strides = array<i32: 2, 1>} : memref<17x16xf32, #tpu.memory_space<vmem>>, vector<8x16xf32>
    %c1_39 = arith.constant 1 : index
    %c0_40 = arith.constant 0 : index
    %40 = tpu.strided_load %arg16[%c1_39, %c0_40] {strides = array<i32: 2, 1>} : memref<17x16xf32, #tpu.memory_space<vmem>>, vector<8x16xf32>
    %c2_41 = arith.constant 2 : index
    %c0_42 = arith.constant 0 : index
    %41 = tpu.strided_load %arg16[%c2_41, %c0_42] {strides = array<i32: 2, 1>} : memref<17x16xf32, #tpu.memory_space<vmem>>, vector<8x16xf32>
    %42 = tpu.concatenate %39, %40, %41 in 1 : vector<8x16xf32>, vector<8x16xf32>, vector<8x16xf32> -> vector<8x48xf32>
    %c0_43 = arith.constant 0 : index
    %c0_44 = arith.constant 0 : index
    %43 = vector.load %arg7[%c0_43, %c0_44] : memref<48x8xf32, #tpu.memory_space<vmem>>, vector<48x8xf32>
    %cst_45 = arith.constant dense<0.000000e+00> : vector<8x8xf32>
    %44 = tpu.matmul %42, %43, %cst_45 {dimension_numbers = #tpu.dot_dimension_numbers<[1], [0], [0], [1], [0, 0, 1, 1], [], []>} : vector<8x48xf32>, vector<48x8xf32>, vector<8x8xf32> -> vector<8x8xf32>
    %c0_46 = arith.constant 0 : index
    %c0_47 = arith.constant 0 : index
    %45 = vector.load %arg8[%c0_46, %c0_47] : memref<1x8xf32, #tpu.memory_space<vmem>>, vector<1x8xf32>
    %46 = vector.broadcast %45 : vector<1x8xf32> to vector<8x8xf32>
    %47 = arith.addf %44, %46 : vector<8x8xf32>
    %cst_48 = arith.constant 5.000000e+00 : f32
    %48 = vector.broadcast %cst_48 : f32 to vector<8x8xf32>
    %49 = arith.subf %47, %48 : vector<8x8xf32>
    %cst_49 = arith.constant 0.000000e+00 : f32
    %50 = vector.broadcast %cst_49 : f32 to vector<8x8xf32>
    %51 = arith.subf %50, %49 : vector<8x8xf32>
    %52 = math.exp %51 : vector<8x8xf32>
    %cst_50 = arith.constant 1.000000e+00 : f32
    %53 = vector.broadcast %cst_50 : f32 to vector<8x8xf32>
    %54 = arith.addf %53, %52 : vector<8x8xf32>
    %cst_51 = arith.constant 1.000000e+00 : f32
    %55 = vector.broadcast %cst_51 : f32 to vector<8x8xf32>
    %56 = arith.divf %55, %54 : vector<8x8xf32>
    %57 = math.log %56 : vector<8x8xf32>
    %cst_52 = arith.constant 2.300000e+00 : f32
    %58 = vector.broadcast %cst_52 : f32 to vector<8x8xf32>
    %59 = arith.mulf %58, %57 : vector<8x8xf32>
    %60 = math.exp %59 : vector<8x8xf32>
    %cst_53 = arith.constant 2.000000e+00 : f32
    %61 = vector.broadcast %cst_53 : f32 to vector<8x8xf32>
    %62 = arith.mulf %61, %60 : vector<8x8xf32>
    %cst_54 = arith.constant 1.000000e-07 : f32
    %63 = vector.broadcast %cst_54 : f32 to vector<8x8xf32>
    %64 = arith.addf %62, %63 : vector<8x8xf32>
    %c0_55 = arith.constant 0 : index
    %c0_56 = arith.constant 0 : index
    %c0_57 = arith.constant 0 : index
    %65 = vector.load %arg2[%c0_55, %c0_56, %c0_57] : memref<1x8x16xf32, #tpu.memory_space<vmem>>, vector<1x8x16xf32>
    %66 = vector.shape_cast %65 : vector<1x8x16xf32> to vector<8x16xf32>
    %c0_58 = arith.constant 0 : index
    %c0_59 = arith.constant 0 : index
    %67 = vector.load %arg9[%c0_58, %c0_59] : memref<8x16xf32, #tpu.memory_space<vmem>>, vector<8x16xf32>
    %cst_60 = arith.constant dense<0.000000e+00> : vector<8x16xf32>
    %68 = tpu.matmul %64, %67, %cst_60 {dimension_numbers = #tpu.dot_dimension_numbers<[1], [0], [0], [1], [0, 0, 1, 1], [], []>} : vector<8x8xf32>, vector<8x16xf32>, vector<8x16xf32> -> vector<8x16xf32>
    %c0_61 = arith.constant 0 : index
    %c0_62 = arith.constant 0 : index
    %69 = vector.load %arg10[%c0_61, %c0_62] : memref<16x128xf32, #tpu.memory_space<vmem>>, vector<16x128xf32>
    %cst_63 = arith.constant dense<0.000000e+00> : vector<8x128xf32>
    %70 = tpu.matmul %68, %69, %cst_63 {dimension_numbers = #tpu.dot_dimension_numbers<[1], [0], [0], [1], [0, 0, 1, 1], [], []>} : vector<8x16xf32>, vector<16x128xf32>, vector<8x128xf32> -> vector<8x128xf32>
    %c0_64 = arith.constant 0 : index
    %c0_65 = arith.constant 0 : index
    %71 = vector.load %arg11[%c0_64, %c0_65] : memref<16x128xf32, #tpu.memory_space<vmem>>, vector<16x128xf32>
    %cst_66 = arith.constant dense<0.000000e+00> : vector<8x128xf32>
    %72 = tpu.matmul %66, %71, %cst_66 {dimension_numbers = #tpu.dot_dimension_numbers<[1], [0], [0], [1], [0, 0, 1, 1], [], []>} : vector<8x16xf32>, vector<16x128xf32>, vector<8x128xf32> -> vector<8x128xf32>
    %73 = arith.mulf %70, %72 : vector<8x128xf32>
    %c0_67 = arith.constant 0 : index
    %c0_68 = arith.constant 0 : index
    %74 = vector.load %arg12[%c0_67, %c0_68] : memref<128x16xf32, #tpu.memory_space<vmem>>, vector<128x16xf32>
    %cst_69 = arith.constant dense<0.000000e+00> : vector<8x16xf32>
    %75 = tpu.matmul %73, %74, %cst_69 {dimension_numbers = #tpu.dot_dimension_numbers<[1], [0], [0], [1], [0, 0, 1, 1], [], []>} : vector<8x128xf32>, vector<128x16xf32>, vector<8x16xf32> -> vector<8x16xf32>
    %c0_70 = arith.constant 0 : index
    %c0_71 = arith.constant 0 : index
    %c0_72 = arith.constant 0 : index
    %76 = vector.load %arg13[%c0_70, %c0_71, %c0_72] : memref<1x8x16xf32, #tpu.memory_space<vmem>>, vector<1x8x16xf32>
    %77 = vector.shape_cast %76 : vector<1x8x16xf32> to vector<8x16xf32>
    %78 = vector.shape_cast %75 : vector<8x16xf32> to vector<1x8x16xf32>
    tpu.vector_store %arg13[%c0_70, %c0_71, %c0_72], %78 {strides = array<i32>} : memref<1x8x16xf32, #tpu.memory_space<vmem>>, vector<1x8x16xf32>,
    return
  }
  func.func @transform_0(%arg0: i32) -> (i32, i32, i32) {
    %c0_i32 = arith.constant 0 : i32
    %c0_i32_0 = arith.constant 0 : i32
    %c0_i32_1 = arith.constant 0 : i32
    return %arg0, %c0_i32, %c0_i32_0 : i32, i32, i32
  }
  func.func @transform_1(%arg0: i32) -> (i32, i32, i32) {
    %c0_i32 = arith.constant 0 : i32
    %c0_i32_0 = arith.constant 0 : i32
    %c0_i32_1 = arith.constant 0 : i32
    return %arg0, %c0_i32, %c0_i32_0 : i32, i32, i32
  }
  func.func @transform_2(%arg0: i32) -> (i32, i32) {
    %c0_i32 = arith.constant 0 : i32
    %c0_i32_0 = arith.constant 0 : i32
    %c0_i32_1 = arith.constant 0 : i32
    return %c0_i32, %c0_i32_0 : i32, i32
  }
  func.func @transform_3(%arg0: i32) -> (i32, i32) {
    %c0_i32 = arith.constant 0 : i32
    %c0_i32_0 = arith.constant 0 : i32
    %c0_i32_1 = arith.constant 0 : i32
    return %c0_i32, %c0_i32_0 : i32, i32
  }
  func.func @transform_4(%arg0: i32) -> (i32, i32) {
    %c0_i32 = arith.constant 0 : i32
    %c0_i32_0 = arith.constant 0 : i32
    %c0_i32_1 = arith.constant 0 : i32
    return %c0_i32, %c0_i32_0 : i32, i32
  }
  func.func @transform_5(%arg0: i32) -> (i32, i32) {
    %c0_i32 = arith.constant 0 : i32
    %c0_i32_0 = arith.constant 0 : i32
    %c0_i32_1 = arith.constant 0 : i32
    return %c0_i32, %c0_i32_0 : i32, i32
  }
  func.func @transform_6(%arg0: i32) -> (i32, i32) {
    %c0_i32 = arith.constant 0 : i32
    %c0_i32_0 = arith.constant 0 : i32
    %c0_i32_1 = arith.constant 0 : i32
    return %c0_i32, %c0_i32_0 : i32, i32
  }
  func.func @transform_7(%arg0: i32) -> (i32, i32) {
    %c0_i32 = arith.constant 0 : i32
    %c0_i32_0 = arith.constant 0 : i32
    %c0_i32_1 = arith.constant 0 : i32
    return %c0_i32, %c0_i32_0 : i32, i32
  }
  func.func @transform_8(%arg0: i32) -> (i32, i32) {
    %c0_i32 = arith.constant 0 : i32
    %c0_i32_0 = arith.constant 0 : i32
    %c0_i32_1 = arith.constant 0 : i32
    return %c0_i32, %c0_i32_0 : i32, i32
  }
  func.func @transform_9(%arg0: i32) -> (i32, i32) {
    %c0_i32 = arith.constant 0 : i32
    %c0_i32_0 = arith.constant 0 : i32
    %c0_i32_1 = arith.constant 0 : i32
    return %c0_i32, %c0_i32_0 : i32, i32
  }
  func.func @transform_10(%arg0: i32) -> (i32, i32) {
    %c0_i32 = arith.constant 0 : i32
    %c0_i32_0 = arith.constant 0 : i32
    %c0_i32_1 = arith.constant 0 : i32
    return %c0_i32, %c0_i32_0 : i32, i32
  }
  func.func @transform_11(%arg0: i32) -> (i32, i32) {
    %c0_i32 = arith.constant 0 : i32
    %c0_i32_0 = arith.constant 0 : i32
    %c0_i32_1 = arith.constant 0 : i32
    return %c0_i32, %c0_i32_0 : i32, i32
  }
  func.func @transform_12(%arg0: i32) -> (i32, i32, i32) {
    %c0_i32 = arith.constant 0 : i32
    %c0_i32_0 = arith.constant 0 : i32
    %c0_i32_1 = arith.constant 0 : i32
    return %arg0, %c0_i32, %c0_i32_0 : i32, i32, i32
  }
}

</mosaic_0001>

<bundles_post_ra>
// kernel: tpu_custom_call.1
= control target key start
LH: loop header
LB: loop body
LE: loop exit
PB: predicated region body
PF: predicated region fallthrough
CT: control target
= control target key end

     0   :  { %s2029_s0 = inlined_call_operand.vmem [shape: f32[2,64,16], index: 0, kind: input, shape index: {}]   ;;  %s2030_s1 = inlined_call_operand.vmem [shape: f32[2,8,16], index: 1, kind: input, shape index: {}]   ;;  %s2031_s2 = inlined_call_operand.vmem [shape: f32[48,16], index: 2, kind: input, shape index: {}]   ;;  %s2032_s3 = inlined_call_operand.vmem [shape: f32[1,16], index: 3, kind: input, shape index: {}]   ;;  %s2033_s4 = inlined_call_operand.vmem [shape: f32[48,16], index: 4, kind: input, shape index: {}]   ;;  %s2034_s5 = inlined_call_operand.vmem [shape: f32[1,16], index: 5, kind: input, shape index: {}]   ;;  %s2035_s6 = inlined_call_operand.vmem [shape: f32[48,8], index: 6, kind: input, shape index: {}]   ;;  %s2036_s7 = inlined_call_operand.vmem [shape: f32[1,8], index: 7, kind: input, shape index: {}]   ;;  %s2037_s8 = inlined_call_operand.vmem [shape: f32[8,16], index: 8, kind: input, shape index: {}]   ;;  %s2038_s9 = inlined_call_operand.vmem [shape: f32[16,128], index: 9, kind: input, shape index: {}]   ;;  %s2039_s10 = inlined_call_operand.vmem [shape: f32[16,128], index: 10, kind: input, shape index: {}]   ;;  %s2040_s11 = inlined_call_operand.vmem [shape: f32[128,16], index: 11, kind: input, shape index: {}]   ;;  %s2041_s12 = inlined_call_operand.hbm [shape: f32[2,8,16], index: 12, kind: output, shape index: {}]  }
   0x1   :  { %2046 = sst [smem:[#allocation9_spill]] %s2029_s0 }
   0x2   :  { %17 = vsyncpa [#allocation6], 0 }
   0x3   :  { %19 = vsyncpa [#allocation6 + $0x1], 0  ;;  %s1717_s21 = smov 0   ;;  %s1719_s22 = smov 0  }
   0x4   :  { %s1721_s23 = smov 0   ;;  %s1723_s24 = smov 0  }
   0x5 LB: > { %s1738_s25 = sadd.s32 4294967295, %s1644_s24   ;;  %s1288_s26 = sadd.s32 4294967294, %s1644_s24   ;;  %s1644_s24 = sphi %s1723_s24, %s2057_s24   ;;  %s1640_s23 = sphi %s1721_s23, %s2056_s23   ;;  %s1636_s22 = sphi %s1719_s22, %s2055_s22   ;;  %s1632_s21 = sphi %s1717_s21, %s2054_s21  }
   0x6   : > { %s1742_s27 = sadd.s32 1, %s1644_s24   ;;  %s294_s28 = sadd.s32 1, %s1640_s23 }
   0x7   : > { %s291_s29 = ssub.s32 %s1644_s24, %s1742_s27  ;;  %p304_p0 = scmp.ne.s32.totalorder %s1640_s23, %s1636_s22 }
   0x8   : > { %p292_p1 = scmp.eq.s32.totalorder %s291_s29, 0  ;;  %p305_p2 = scmp.eq.s32.totalorder %s1738_s25, 1 }
   0x9   : > { %p310_p3 = scmp.ne.s32.totalorder %s1636_s22, %s1632_s21  ;;  %p311_p4 = scmp.eq.s32.totalorder %s1288_s26, 1 }
   0xa   : > { %s1753_s30 = scalar_select %p292_p1, %s1640_s23, %s294_s28  }
   0xb   : > { %p1755_p5 = por %p305_p2, %p304_p0  ;;  %p1759_p6 = por %p311_p4, %p310_p3 }
   0xc   : > { %2047 = sst [smem:[#allocation8_spill]] %s1753_s30  ;;  %p1291_p7 = scmp.ge.s32.totalorder %s1644_s24, 1 }
   0xd   : > { %p374_p8 = scmp.lt.s32.totalorder %s1644_s24, 3 }
   0xf   : > { %p375_p9 = pnand %p1291_p7, %p374_p8 }
  0x10   : > { %p420_p10 = scmp.lt.s32.totalorder (!%p375_p9), %s1738_s25, 1  ;;  %vm437_vm0 = vcmask (!%p375_p9), 122880   ;;  %v512_v0 = vld [vmem:[%s2031_s2] sm:$0xff] (!%p375_p9)  ;;  %v1646_v1 = vmov (!%p375_p9), 0.0   ;;  %v513_v2 = vld [vmem:[%s2031_s2 + $0x8] sm:$0xff] (!%p375_p9)  ;;  %v514_v3 = vld [vmem:[%s2031_s2 + $0x10] sm:$0xff] (!%p375_p9) }
  0x11   : > { %378 = sbr.rel (%p375_p9) target bundleno = 1787 (0x6fb), region = 68  ;;  %438 = vst.msk [vmem:[#allocation2 + $0x40] sm:$0x1] (!%p375_p9), %vm437_vm0, %v1646_v1  ;;  %635 = vst.msk [vmem:[#allocation3 + $0x20] sm:$0x1] (!%p375_p9), %vm437_vm0, %v1646_v1  ;;  %v515_v4 = vld [vmem:[%s2031_s2 + $0x18] sm:$0xff] (!%p375_p9)  ;;  %v1467_v5 = vpack.c.bf16 (!%p375_p9), %v513_v2, %v512_v0 }
  0x12   : > { %771 = vst.msk [vmem:[#allocation4 + $0x10] sm:$0x1] (!%p375_p9), %vm437_vm0, %v1646_v1  ;;  %v1471_v6 = vpack.c.bf16 (!%p375_p9), %v515_v4, %v514_v3  ;;  %v516_v7 = vld [vmem:[%s2031_s2 + $0x20] sm:$0xff] (!%p375_p9)  ;;  %v517_v8 = vld [vmem:[%s2031_s2 + $0x28] sm:$0xff] (!%p375_p9)  ;;  %vm439_vm1 = vcmask (!%p375_p9), 130048   ;;  %s2050_s0 = sld [smem:[#allocation9_spill]] (!%p375_p9) }
  0x13   : > { %1468 = vmatprep.subr.bf16.mxu1 (!%p375_p9), %v1467_v5  ;;  %v1475_v12 = vpack.c.bf16 (!%p375_p9), %v517_v8, %v516_v7  ;;  %s2042_s30 = smov (!%p375_p9), 32   ;;  %s2044_s28 = smov (!%p375_p9), 16   ;;  %vm507_vm2 = vcmask (!%p375_p9), 261120   ;;  %vm525_vm3 = vcmask (!%p375_p9), 392192   ;;  %v1296_v46 = vld [vmem:[%s2032_s3] ss:$0 sm:$0xff] (!%p375_p9) }
  0x14   : > { %1470 = vmatpush3.bf16.msra.mxu1 (!%p375_p9), %v1467_v5  ;;  %v671_v48 = vld [vmem:[%s2033_s4] sm:$0xff] (!%p375_p9)  ;;  %v672_v49 = vld [vmem:[%s2033_s4 + $0x8] sm:$0xff] (!%p375_p9)  ;;  %v673_v54 = vld [vmem:[%s2033_s4 + $0x10] sm:$0xff] (!%p375_p9)  ;;  %s2052_s19 = smov (!%p375_p9), 32   ;;  %vm1650_vm9 = vmmov (!%p375_p9), 0   ;;  %vm891_vm11 = vcmask (!%p375_p9), 64512  }
  0x15   : > { %1472 = vmatprep.subr.bf16.mxu1 (!%p375_p9), %v1471_v6  ;;  %v1479_v52 = vpack.c.bf16 (!%p375_p9), %v672_v49, %v671_v48  ;;  %v674_v55 = vld [vmem:[%s2033_s4 + $0x18] sm:$0xff] (!%p375_p9)  ;;  %v675_v0 = vld [vmem:[%s2033_s4 + $0x20] sm:$0xff] (!%p375_p9)  ;;  %v676_v2 = vld [vmem:[%s2033_s4 + $0x28] sm:$0xff] (!%p375_p9)  ;;  %1410 = vmatprep.mubr.msk.f32.mxu0 (!%p375_p9), %vm1650_vm9, %v1646_v1 }
  0x16   : > { %v1483_v57 = vpack.c.bf16 (!%p375_p9), %v674_v55, %v673_v54  ;;  %v1487_v4 = vpack.c.bf16 (!%p375_p9), %v676_v2, %v675_v0  ;;  %v890_v49 = vld [vmem:[%s2037_s8] sm:$0xff] (!%p375_p9)  ;;  %v966_v2 = vld [vmem:[%s2038_s9 + $0x8] sm:$0xff] (!%p375_p9) }
  0x17   : > { %v965_v0 = vld [vmem:[%s2038_s9] sm:$0xff] (!%p375_p9) }
  0x18   : > { %s1782_s29 = scalar_select %p420_p10, %s1738_s25, 1  ;;  %1474 = vmatpush3.bf16.msra.mxu1 %v1471_v6 }
  0x19   : > { %1476 = vmatprep.subr.bf16.mxu1 %v1475_v12 }
  0x1a   : > { %s1314_s18 = sshll.u32 %s1782_s29, 6  ;;  %s1295_s15 = sshll.u32 %s1782_s29, 3 }
  0x1b   : > { %s424_s26 = scalar_lea.vmem %s2050_s0, %s1314_s18  ;;  %s2051_s18 = smov 16  }
  0x1c   : > { %v429_v9 = vld [vmem:[%s424_s26] sm:$0xff]  ;;  %v430_v10 = vld [vmem:[%s424_s26 + $0x8] sm:$0xff]  ;;  %v431_v11 = vld [vmem:[%s424_s26 + $0x10] sm:$0xff]  ;;  %1478 = vmatpush3.bf16.msra.mxu1 %v1475_v12 }
  0x1d   : > { %440 = vst.msk [vmem:[#allocation2] sm:$0xff] %vm439_vm1, %v429_v9  ;;  %441 = vst.msk [vmem:[#allocation2 + $0x8] sm:$0xff] %vm439_vm1, %v430_v10  ;;  %v432_v13 = vld [vmem:[%s424_s26 + $0x18] sm:$0xff]  ;;  %v433_v14 = vld [vmem:[%s424_s26 + $0x20] sm:$0xff]  ;;  %1480 = vmatprep.subr.bf16.mxu1 %v1479_v52 }
  0x1e   : > { %442 = vst.msk [vmem:[#allocation2 + $0x10] sm:$0xff] %vm439_vm1, %v431_v11  ;;  %v435_v15 = vld [vmem:[%s424_s26 + $0x30] sm:$0xff]  ;;  %443 = vst.msk [vmem:[#allocation2 + $0x18] sm:$0xff] %vm439_vm1, %v432_v13  ;;  %v436_v16 = vld [vmem:[%s424_s26 + $0x38] sm:$0xff] }
  0x1f   : > { %444 = vst.msk [vmem:[#allocation2 + $0x20] sm:$0xff] %vm439_vm1, %v433_v14  ;;  %446 = vst.msk [vmem:[#allocation2 + $0x30] sm:$0xff] %vm439_vm1, %v435_v15  ;;  %v434_v17 = vld [vmem:[%s424_s26 + $0x28] sm:$0xff] }
  0x20   : > { %447 = vst.msk [vmem:[#allocation2 + $0x38] sm:$0xff] %vm439_vm1, %v436_v16  ;;  %445 = vst.msk [vmem:[#allocation2 + $0x28] sm:$0xff] %vm439_vm1, %v434_v17 }
  0x24   : > { %v456_v19 = vld [vmem:[#allocation2 + $0x1] ss:$2 sm:$0xff]  ;;  %v448_v26 = vld [vmem:[#allocation2] ss:$2 sm:$0xff] }
  0x25   : > { %v464_v18 = vld [vmem:[#allocation2 + $0x2] ss:$2 sm:$0xff]  ;;  %475 = vrot.lane.b32.xlu0 %v456_v19, %s2044_s28  ;;  %v458_v21 = vld [vmem:[#allocation2 + $0x11] ss:$2 sm:$0xff] }
  0x26   : > { %491 = vrot.lane.b32.xlu1 %v464_v18, %s2042_s30  ;;  %v466_v20 = vld [vmem:[#allocation2 + $0x12] ss:$2 sm:$0xff] }
  0x27   : > { %v462_v22 = vld [vmem:[#allocation2 + $0x31] ss:$2 sm:$0xff]  ;;  %v460_v23 = vld [vmem:[#allocation2 + $0x21] ss:$2 sm:$0xff]  ;;  %v470_v24 = vld [vmem:[#allocation2 + $0x32] ss:$2 sm:$0xff] }
  0x28   : > { %v468_v25 = vld [vmem:[#allocation2 + $0x22] ss:$2 sm:$0xff] }
  0x29   : > { %477 = vrot.lane.b32.xlu0 %v458_v21, %s2044_s28  ;;  %v450_v31 = vld [vmem:[#allocation2 + $0x10] ss:$2 sm:$0xff]  ;;  %v452_v39 = vld [vmem:[#allocation2 + $0x20] ss:$2 sm:$0xff] }
  0x2a   : > { %493 = vrot.lane.b32.xlu1 %v466_v20, %s2042_s30  ;;  %v454_v38 = vld [vmem:[#allocation2 + $0x30] ss:$2 sm:$0xff] }
  0x2d   : > { %479 = vrot.lane.b32.xlu0 %v460_v23, %s2044_s28  ;;  %v789_v23 = vld [vmem:[%s2035_s6] sm:$0xff] }
  0x2e   : > { %481 = vrot.lane.b32.xlu1 %v462_v22, %s2044_s28  ;;  %s428_s28 = scalar_lea.vmem %s2030_s1, %s1295_s15 }
  0x31   : > { %495 = vrot.lane.b32.xlu0 %v468_v25, %s2042_s30  ;;  %v791_v25 = vld [vmem:[%s2035_s6 + $0x10] sm:$0xff] }
  0x32   : > { %497 = vrot.lane.b32.xlu1 %v470_v24, %s2042_s30  ;;  %v790_v24 = vld [vmem:[%s2035_s6 + $0x8] sm:$0xff]  ;;  %s417_s30 = sand.u32 1, %s1636_s22  }
  0x33   : > { %s1292_s0 = sshll.u32 %s417_s30, 3  ;;  %s1204_s20 = scalar_lea.sflag [#allocation6], %s417_s30 }
  0x34   : > { %s419_s16 = scalar_lea.vmem [#allocation5], %s1292_s0 }
  0x35   : > { %s1217_s17 = sshll.u32 %s419_s16, 4  ;;  %s1988_s17 = int_to_ptr.vmem [resolvable:$true] %s1217_s17 }
  0x36   : > { %s1582_s26 = scalar_lea.vmem %s1988_s17, 128 }
  0x37   : > { %p1583_p11 = scmp.ne.s32.totalorder %s1988_s17, %s1582_s26 }
  0x39   : > { %p1584_p12 = pnand %p1583_p11, %p1755_p5 }
  0x3b   : > { %p1585_p13 = pneg %p1584_p12 }
  0x97   : > { %v476_v28 = vpop.permute.xlu0 %475 }
  0x98   : > { %v492_v27 = vpop.permute.xlu1 %491  ;;  %v503_v29 = vsel %vm439_vm1, %v448_v26, %v476_v28  ;;  %v1649_v26 = vmov 0.0|0.0   ;;  %v792_v28 = vld [vmem:[%s2035_s6 + $0x18] sm:$0xff] }
  0x99   : > { %v508_v30 = vsel %vm507_vm2, %v503_v29, %v492_v27  ;;  %1491 = vmatprep.subr.bf16.mxu0 %v1649_v26  ;;  %v1492_v27 = vpack.c.bf16 %v790_v24, %v789_v23  ;;  %v1495_v29 = vpack.c.bf16 %v792_v28, %v791_v25  ;;  %v1127_v23 = vld [vmem:[%s2040_s11 + $0x58] sm:$0xff]  ;;  %v1040_v25 = vld [vmem:[%s2039_s10] sm:$0xff] }
  0x9a   : > { %1377 = vmatprep.mubr.msk.f32.mxu1 %vm525_vm3, %v508_v30  ;;  %v793_v30 = vld [vmem:[%s2035_s6 + $0x20] sm:$0xff] }
  0x9b   : > { %v478_v33 = vpop.permute.xlu0 %477  ;;  %1493 = vmatpush3.bf16.msra.mxu0 %v1492_v27  ;;  %v1041_v27 = vld [vmem:[%s2039_s10 + $0x8] sm:$0xff] }
  0x9c   : > { %v494_v32 = vpop.permute.xlu1 %493  ;;  %v504_v34 = vsel %vm439_vm1, %v450_v31, %v478_v33  ;;  %1494 = vmatprep.subr.bf16.mxu0 %v1649_v26  ;;  %v794_v31 = vld [vmem:[%s2035_s6 + $0x28] sm:$0xff]  ;;  %v1301_v33 = vld [vmem:[%s2034_s5] ss:$0 sm:$0xff]  ;;  %v1504_v28 = vpack.c.bf16 %v1041_v27, %v1040_v25 }
  0x9d   : > { %v509_v35 = vsel %vm507_vm2, %v504_v34, %v494_v32  ;;  %v1498_v32 = vpack.c.bf16 %v794_v31, %v793_v30  ;;  %v889_v31 = vld [vmem:[%s428_s28] sm:$0xff]  ;;  %s1311_s28 = sshll.u32 %s1738_s25, 7  ;;  %s1651_s25 = smov [#allocation5]  }
  0x9e   : > { %1378 = vmatmul.mubr.msk.f32.vlgmr.msra.gmra.mrb[0].mxu1 %vm525_vm3, %v509_v35  ;;  %s1586_s15 = sshll.u32 %s1651_s25, 4  ;;  %s1587_s15 = int_to_ptr.vmem [resolvable:$false] %s1586_s15 }
  0x9f   : > { %v480_v37 = vpop.permute.xlu0 %479  ;;  %1482 = vmatpush3.bf16.msra.mxu1 %v1479_v52  ;;  %1496 = vmatpush3.bf16.msra.mxu0 %v1495_v29  ;;  %s1588_s0 = scalar_lea.vmem %s1587_s15, 256  ;;  %p1589_p0 = scmp.lt.s32.totalorder %s1988_s17, %s1587_s15 }
  0xa0   : > { %v482_v36 = vpop.permute.xlu1 %481  ;;  %v505_v41 = vsel %vm439_vm1, %v452_v39, %v480_v37  ;;  %1484 = vmatprep.subr.bf16.mxu1 %v1483_v57  ;;  %1497 = vmatprep.subr.bf16.mxu0 %v1649_v26  ;;  %p1590_p1 = scmp.lt.s32.totalorder %s1588_s0, %s1582_s26 }
  0xa1   : > { %v506_v40 = vsel %vm439_vm1, %v454_v38, %v482_v36 }
  0xa2   : > { %p1591_p2 = por %p1590_p1, %p1589_p0 }
  0xa3   : > { %v496_v43 = vpop.permute.xlu0 %495  ;;  %1486 = vmatpush3.bf16.msra.mxu1 %v1483_v57  ;;  %1499 = vmatpush3.bf16.msra.mxu0 %v1498_v32  ;;  %v1128_v32 = vld [vmem:[%s2040_s11 + $0x60] sm:$0xff] }
  0xa4   : > { %v498_v42 = vpop.permute.xlu1 %497  ;;  %v510_v45 = vsel %vm507_vm2, %v505_v41, %v496_v43  ;;  %1488 = vmatprep.subr.bf16.mxu1 %v1487_v4  ;;  %1506 = vmatprep.subr.bf16.mxu0 %v1649_v26  ;;  %p1592_p3 = pnand %p1591_p2, %p1585_p13 }
  0xa5   : > { %v511_v44 = vsel %vm507_vm2, %v506_v40, %v498_v42  ;;  %1380 = vmatprep.mubr.msk.f32.mxu1 %vm525_vm3, %v510_v45 }
  0xa6   : > { %1381 = vmatmul.mubr.msk.f32.gmra.mrb[2].mxu1 %vm525_vm3, %v511_v44 }
  0xa7   : > { %1490 = vmatpush3.bf16.msra.mxu1 %v1487_v4 }
  0xa8   : > { %1413 = vmatprep.subr.mxu1 %v1646_v1 }
 0x171   : > { %v1379_v47 = vpop.f32.mrb[0].mxu1 }
 0x172   : > { %v610_v50 = vadd.f32 %v1379_v47, %v1296_v46  ;;  %v604_v51 = vpop.f32.mrb[1].mxu1 }
 0x173   : > { %v605_v53 = vadd.f32 %v1296_v46, %v604_v51 }
 0x174   : > { %vm624_vm4 = vcmp.gt.f32.partialorder %v610_v50, 0.0  ;;  %v628_v56 = vmul.f32 0.2, %v610_v50 }
 0x175   : > { %vm623_vm5 = vcmp.gt.f32.partialorder %v605_v53, 0.0  ;;  %v627_v58 = vmul.f32 0.2, %v605_v53 }
 0x176   : > { %v632_v59 = vsel %vm624_vm4, %v610_v50, %v628_v56  ;;  %v1304_v50 = vld [vmem:[%s2036_s7] ss:$0 sm:$0xff] }
 0x177   : > { %637 = vst.msk [vmem:[#allocation3 + $0x8] sm:$0xff] %vm439_vm1, %v632_v59  ;;  %v631_v60 = vsel %vm623_vm5, %v605_v53, %v627_v58 }
 0x178   : > { %636 = vst.msk [vmem:[#allocation3] sm:$0xff] %vm439_vm1, %v631_v60 }
 0x179   : > { %v1382_v61 = vpop.f32.mrb[2].mxu1 }
 0x17a   : > { %v620_v62 = vadd.f32 %v1382_v61, %v1296_v46  ;;  %v614_v63 = vpop.f32.mrb[3].mxu1 }
 0x17b   : > { %v615_v3 = vadd.f32 %v1296_v46, %v614_v63 }
 0x17c   : > { %vm626_vm6 = vcmp.gt.f32.partialorder %v620_v62, 0.0  ;;  %v630_v5 = vmul.f32 0.2, %v620_v62 }
 0x17d   : > { %vm625_vm7 = vcmp.gt.f32.partialorder %v615_v3, 0.0  ;;  %v629_v6 = vmul.f32 0.2, %v615_v3 }
 0x17e   : > { %v634_v7 = vsel %vm626_vm6, %v620_v62, %v630_v5  ;;  %v1501_v5 = vpack.c.bf16 %v966_v2, %v965_v0 }
 0x17f   : > { %639 = vst.msk [vmem:[#allocation3 + $0x18] sm:$0xff] %vm439_vm1, %v634_v7  ;;  %v633_v8 = vsel %vm625_vm7, %v615_v3, %v629_v6  ;;  %v644_v9 = vld [vmem:[#allocation3 + $0x1] ss:$2 sm:$0xff]  ;;  %v640_v14 = vld [vmem:[#allocation3] ss:$2 sm:$0xff]  ;;  %v1116_v7 = vld [vmem:[%s2040_s11] sm:$0xff] }
 0x180   : > { %638 = vst.msk [vmem:[#allocation3 + $0x10] sm:$0xff] %vm439_vm1, %v633_v8  ;;  %653 = vrot.lane.b32.xlu0 %v644_v9, %s2051_s18  ;;  %v1117_v8 = vld [vmem:[%s2040_s11 + $0x8] sm:$0xff]  ;;  %v1118_v9 = vld [vmem:[%s2040_s11 + $0x10] sm:$0xff] }
 0x187   : > { %v646_v10 = vld [vmem:[#allocation3 + $0x11] ss:$2 sm:$0xff]  ;;  %v648_v11 = vld [vmem:[#allocation3 + $0x2] ss:$2 sm:$0xff]  ;;  %v650_v12 = vld [vmem:[#allocation3 + $0x12] ss:$2 sm:$0xff] }
 0x188   : > { %655 = vrot.lane.b32.xlu1 %v646_v10, %s2051_s18  ;;  %661 = vrot.lane.b32.xlu0 %v648_v11, %s2052_s19  ;;  %v642_v19 = vld [vmem:[#allocation3 + $0x10] ss:$2 sm:$0xff]  ;;  %v1507_v10 = vpack.c.bf16 %v1117_v8, %v1116_v7 }
 0x189   : > { %v1119_v11 = vld [vmem:[%s2040_s11 + $0x18] sm:$0xff] }
 0x18c   : > { %663 = vrot.lane.b32.xlu1 %v650_v12, %s2052_s19  ;;  %v1510_v12 = vpack.c.bf16 %v1119_v11, %v1118_v9 }
 0x1f2   : > { %v654_v13 = vpop.permute.xlu0 %653 }
 0x1f3   : > { %v667_v15 = vsel %vm439_vm1, %v640_v14, %v654_v13  ;;  %v1120_v13 = vld [vmem:[%s2040_s11 + $0x20] sm:$0xff]  ;;  %v1121_v14 = vld [vmem:[%s2040_s11 + $0x28] sm:$0xff] }
 0x1fa   : > { %v656_v16 = vpop.permute.xlu1 %655  ;;  %v662_v17 = vpop.permute.xlu0 %661 }
 0x1fb   : > { %v669_v18 = vsel %vm507_vm2, %v667_v15, %v662_v17  ;;  %v668_v20 = vsel %vm439_vm1, %v642_v19, %v656_v16  ;;  %v1513_v15 = vpack.c.bf16 %v1121_v14, %v1120_v13  ;;  %v1122_v16 = vld [vmem:[%s2040_s11 + $0x30] sm:$0xff]  ;;  %v1123_v17 = vld [vmem:[%s2040_s11 + $0x38] sm:$0xff]  ;;  %v1124_v19 = vld [vmem:[%s2040_s11 + $0x40] sm:$0xff] }
 0x1fc   : > { %1395 = vmatprep.mubr.msk.f32.mxu1 %vm525_vm3, %v669_v18  ;;  %v1516_v18 = vpack.c.bf16 %v1123_v17, %v1122_v16 }
 0x1fe   : > { %v664_v21 = vpop.permute.xlu1 %663 }
 0x1ff   : > { %v670_v22 = vsel %vm507_vm2, %v668_v20, %v664_v21  ;;  %v1125_v20 = vld [vmem:[%s2040_s11 + $0x48] sm:$0xff] }
 0x200   : > { %1396 = vmatmul.mubr.msk.f32.vlgmr.msra.gmra.mrb[4].mxu1 %vm525_vm3, %v670_v22  ;;  %v1519_v21 = vpack.c.bf16 %v1125_v20, %v1124_v19  ;;  %v1126_v22 = vld [vmem:[%s2040_s11 + $0x50] sm:$0xff] }
 0x201   : > { %1415 = vmatprep.mubr.msk.f32.mxu1 %vm1650_vm9, %v1646_v1  ;;  %1414 = vmatpush3.msra.mxu1 %v890_v49  ;;  %v1522_v24 = vpack.c.bf16 %v1127_v23, %v1126_v22 }
 0x202   : > { %1500 = vmatprep.subr.bf16.mxu1 %v1649_v26 }
 0x2d3   : > { %v1397_v34 = vpop.f32.mrb[4].mxu1 }
 0x2d4   : > { %v762_v35 = vadd.f32 %v1397_v34, %v1301_v33  ;;  %v756_v36 = vpop.f32.mrb[5].mxu1 }
 0x2d5   : > { %v757_v37 = vadd.f32 %v1301_v33, %v756_v36  ;;  %v1129_v33 = vld [vmem:[%s2040_s11 + $0x68] sm:$0xff] }
 0x2d6   : > { %vm766_vm8 = vcmp.gt.f32.partialorder %v762_v35, 0.0  ;;  %v768_v38 = vmul.f32 0.2, %v762_v35  ;;  %v1525_v34 = vpack.c.bf16 %v1129_v33, %v1128_v32 }
 0x2d7   : > { %vm765_vm10 = vcmp.gt.f32.partialorder %v757_v37, 0.0  ;;  %v767_v39 = vmul.f32 0.2, %v757_v37 }
 0x2d8   : > { %v770_v40 = vsel %vm766_vm8, %v762_v35, %v768_v38  ;;  %v1131_v35 = vld [vmem:[%s2040_s11 + $0x78] sm:$0xff] }
 0x2d9   : > { %773 = vst.msk [vmem:[#allocation4 + $0x8] sm:$0xff] %vm439_vm1, %v770_v40  ;;  %v769_v41 = vsel %vm765_vm10, %v757_v37, %v767_v39 }
 0x2da   : > { %772 = vst.msk [vmem:[#allocation4] sm:$0xff] %vm439_vm1, %v769_v41 }
 0x2e1   : > { %v778_v42 = vld [vmem:[#allocation4 + $0x2] ss:$2 sm:$0xff]  ;;  %v776_v43 = vld [vmem:[#allocation4 + $0x1] ss:$2 sm:$0xff] }
 0x2e2   : > { %784 = vrot.lane.b32.xlu1 %v778_v42, %s2052_s19  ;;  %780 = vrot.lane.b32.xlu0 %v776_v43, %s2051_s18  ;;  %v774_v46 = vld [vmem:[#allocation4] ss:$2 sm:$0xff]  ;;  %s1986_s19 = scalar_lea.hbm %s2041_s12, %s1311_s28 }
 0x354   : > { %v785_v44 = vpop.permute.xlu1 %784  ;;  %v781_v45 = vpop.permute.xlu0 %780 }
 0x355   : > { %v787_v47 = vsel %vm439_vm1, %v774_v46, %v781_v45 }
 0x356   : > { %v788_v48 = vsel %vm507_vm2, %v787_v47, %v785_v44 }
 0x357   : > { %1411 = vmatmul.mubr.msk.f32.vlgmr.msra.gmra.mrb[0].mxu0 %vm525_vm3, %v788_v48 }
 0x358   : > { %1464 = vmatprep.mubr.msk.f32.mxu0 %vm1650_vm9, %v1646_v1  ;;  %1508 = vmatpush3.bf16.msra.mxu0 %v1507_v10 }
 0x359   : > { %1509 = vmatprep.subr.bf16.mxu0 %v1649_v26 }
 0x35c   : > { %1511 = vmatpush3.bf16.msra.mxu0 %v1510_v12 }
 0x35d   : > { %1512 = vmatprep.subr.bf16.mxu0 %v1649_v26 }
 0x360   : > { %1514 = vmatpush3.bf16.msra.mxu0 %v1513_v15 }
 0x361   : > { %1515 = vmatprep.subr.bf16.mxu0 %v1649_v26 }
 0x364   : > { %1517 = vmatpush3.bf16.msra.mxu0 %v1516_v18 }
 0x365   : > { %1518 = vmatprep.subr.bf16.mxu0 %v1649_v26 }
 0x368   : > { %1520 = vmatpush3.bf16.msra.mxu0 %v1519_v21 }
 0x369   : > { %1521 = vmatprep.subr.bf16.mxu0 %v1649_v26 }
 0x36c   : > { %1523 = vmatpush3.bf16.msra.mxu0 %v1522_v24 }
 0x36d   : > { %1524 = vmatprep.subr.bf16.mxu0 %v1649_v26 }
 0x370   : > { %1526 = vmatpush3.bf16.msra.mxu0 %v1525_v34 }
 0x371   : > { %1527 = vmatprep.subr.bf16.mxu0 %v1649_v26 }
 0x42a   : > { %v871_v51 = vpop.f32.mrb[0].mxu0 }
 0x42b   : > { %v872_v52 = vadd.f32 %v1304_v50, %v871_v51  ;;  %v1412_v53 = vpop.f32.mrb[1].mxu0 }
 0x42d   : > { %v1306_v54 = vadd.f32 -5.0, %v872_v52 }
 0x42f   : > { %v876_v55 = vsub.f32 0.0, %v1306_v54 }
 0x431   : > { %v877_v56 = vmul.f32 1.442695, %v876_v55 }
 0x433   : > { %1574 = vpow2.f32 %v877_v56 }
 0x43d   : > { %v1575_v57 = vpop.eup %1574 }
 0x43e   : > { %v879_v58 = vadd.f32 1.0, %v1575_v57 }
 0x440   : > { %1576 = vrcp.f32 %v879_v58 }
 0x44a   : > { %v1577_v59 = vpop.eup %1576 }
 0x44b   : > { %1578 = vlog2.f32 %v1577_v59 }
 0x455   : > { %v1579_v60 = vpop.eup %1578 }
 0x456   : > { %v883_v61 = vmul.f32 0.6931472, %v1579_v60 }
 0x458   : > { %v884_v62 = vmul.f32 2.3, %v883_v61 }
 0x45a   : > { %v885_v63 = vmul.f32 1.442695, %v884_v62 }
 0x45c   : > { %1580 = vpow2.f32 %v885_v63 }
 0x466   : > { %v1581_v3 = vpop.eup %1580 }
 0x467   : > { %v887_v4 = vmul.f32 2.0, %v1581_v3 }
 0x469   : > { %v888_v6 = vadd.f32 1e-07, %v887_v4 }
 0x46b   : > { %1416 = vmatmul.mubr.msk.f32.vlgmr.msra.gmra.mrb[6].mxu1 %vm891_vm11, %v888_v6 }
 0x46c   : > { %1502 = vmatpush3.bf16.msra.mxu1 %v1501_v5  ;;  %1422 = vmatprep.mubr.msk.f32.mxu1 %vm1650_vm9, %v1646_v1 }
 0x46d   : > { %1503 = vmatprep.subr.bf16.mxu1 %v1649_v26 }
 0x53e   : > { %v961_v29 = vpop.f32.mrb[6].mxu1 }
 0x53f   : > { %v1417_v30 = vpop.f32.mrb[7].mxu1  ;;  %1423 = vmatmul.mubr.msk.f32.vlgmr.msra.gmra.mrb[8].mxu1 %vm439_vm1, %v961_v29 }
 0x540   : > { %1505 = vmatpush3.bf16.msra.mxu1 %v1504_v28  ;;  %1429 = vmatprep.mubr.msk.f32.mxu1 %vm1650_vm9, %v1646_v1  ;;  %v1130_v1 = vld [vmem:[%s2040_s11 + $0x70] sm:$0xff] }
 0x541   : > { %v1528_v36 = vpack.c.bf16 %v1131_v35, %v1130_v1 }
 0x543   : > { %1430 = vmatmul.mubr.msk.f32.vlgmr.msra.gmra.mrb[10].mxu1 %vm439_vm1, %v889_v31  ;;  %1529 = vmatpush3.bf16.msra.mxu0 %v1528_v36 }
 0x612   : > { %v1036_v37 = vpop.f32.mrb[8].mxu1 }
 0x613   : > { %v1424_v38 = vpop.f32.mrb[9].mxu1 }
 0x616   : > { %v1111_v39 = vpop.f32.mrb[10].mxu1 }
 0x617   : > { %v1115_v40 = vmul.f32 %v1111_v39, %v1036_v37  ;;  %v1431_v41 = vpop.f32.mrb[11].mxu1 }
 0x619   : > { %1465 = vmatmul.mubr.f32.vlgmr.msra.gmra.mrb[2].mxu0 %v1115_v40 }
 0x6ec   : > { %v1198_v26 = vpop.f32.mrb[2].mxu0 }
 0x6ed   : > { %1202 = vst.msk [vmem:[%s419_s16] sm:$0xff] %vm439_vm1, %v1198_v26  ;;  %v1466_v42 = vpop.f32.mrb[3].mxu0 }
 0x6ee   : > { %1595 = shalt.err (!%p1592_p3)
}
 0x6ef   : > { %s1596_s30 = scalar_lea.hbm %s1986_s19, 128  ;;  %s1600_s29 = scalar_lea.hbm %s2041_s12, 256 }
 0x6f0   : > { %p1597_p4 = scmp.ne.s32.totalorder %s1986_s19, %s1596_s30  ;;  %p1601_p9 = scmp.lt.u32.totalorder %s1986_s19, %s2041_s12 }
 0x6f1   : > { %p1602_p10 = scmp.lt.u32.totalorder %s1600_s29, %s1596_s30  ;;  %p1604_p12 = scmp.lt.u32.totalorder %s1596_s30, %s1986_s19 }
 0x6f2   : > { %p1598_p7 = pnand %p1597_p4, %p1755_p5 }
 0x6f3   : > { %p1603_p11 = por %p1602_p10, %p1601_p9 }
 0x6f4   : > { %p1599_p8 = pneg %p1598_p7 }
 0x6f5   : > { %p1605_p13 = por %p1604_p12, %p1603_p11 }
 0x6f7   : > { %p1606_p0 = pnand %p1605_p13, %p1599_p8 }
 0x6f9   : > { %1609 = shalt.err (!%p1606_p0)
}
 0x6fa   : > { %1530 = dma.vmem_to_hbm [thread:$0]  (%p1755_p5), %s1988_s17, 128, %s1986_s19, %s1204_s20  }
 0x6fb PF: > { %p1536_p1 = scmp.ge.s32.totalorder %s1644_s24, 2  ;;  %s1229_s26 = sand.u32 1, %s1632_s21  }
 0x6fc   : > { %s1230_s15 = scalar_lea.sflag [#allocation6], %s1229_s26 }
 0x6fd   : > { %p1533_p2 = pnand %p1536_p1, %p1759_p6 }
 0x6ff   : > { %1627 = dma.done.wait (!%p1533_p2), %s1230_s15, 128  }
 0x700   : > { %1629 = vsyncadd (!%p1533_p2), %s1230_s15, 4294967168  ;;  %s2053_s0 = sld [smem:[#allocation8_spill]]  ;;  %p22_p3 = scmp.ge.s32.totalorder %s1742_s27, 4  }
 0x701   : > { %s2054_s21 = smov %s1636_s22  ;;  %s2055_s22 = smov %s1640_s23 }
 0x702   : > { %s2057_s24 = smov %s1742_s27  ;;  %24 = sbr.rel (!%p22_p3) target bundleno = 5 (0x5), region = 124 }
 0x706   : > { %s2056_s23 = smov %s2053_s0 }
 0x709   :  { %1235 = vsyncpa [#allocation6], 1 }
 0x70a   :  { %1237 = vsyncpa [#allocation6 + $0x1], 1 }

</bundles_post_ra>
